<compile_context>
chip_gen: v6e
topology: v6e:2x2x1
jax: 0.10.0
libtpu: 0.0.40
codegen_flags: <defaults>
</compile_context>

<pallas_src>
import functools

import jax
import jax.numpy as jnp
from jax import lax
from jax.experimental import pallas as pl
from jax.experimental.pallas import tpu as pltpu


def _round_up(x, m):
    return ((x + m - 1) // m) * m


# -----------------------------------------------------------------------------
# Pallas kernel: one im2col matmul per (batch, row-tile) grid step
# -----------------------------------------------------------------------------
def _windmill_kernel(x_ref, w_ref, b_ref, o_ref, *, K, Wp, Wpix):
    """x_ref : (Cin_p, L)         flat haloed row slab (channels on sublanes,
                                  flattened padded spatial on lanes)
       w_ref : (Cout, K*K*Cin_p)  folded weights, columns ordered (ky, kx, c)
       b_ref : (Cout, 1)          final 1x1 bias (broadcast along lanes)
       o_ref : (Cout, TH*Wp)      lane-dense output slab (incl. K-1 junk
                                  columns per row, dropped in the wrapper)
    """
    # K*K statically-shifted windows of the flat slab, stacked along sublanes
    # -> im2col RHS with the full contraction on sublanes, spatial on lanes.
    slabs = [x_ref[:, pl.ds(ky * Wp + kx, Wpix)]
             for ky in range(K) for kx in range(K)]
    rhs = jnp.concatenate(slabs, axis=0)                       # (K*K*Cin_p, Wpix)
    acc = lax.dot_general(                                     # single MXU matmul
        w_ref[...], rhs,
        dimension_numbers=(((1,), (0,)), ((), ())),
        preferred_element_type=jnp.float32)                    # (Cout, Wpix) f32
    o_ref[...] = (acc + b_ref[...]).astype(o_ref.dtype)        # bias in epilogue


# -----------------------------------------------------------------------------
# Weight folding (4 branches + final 1x1 -> one KxK conv)
# -----------------------------------------------------------------------------
def _fold_weights(params, cin_p):
    """Exact fold: flip(conv(flip(x))) == conv with a spatially flipped kernel
    for stride-1 / symmetric zero padding, and everything else is linear."""
    K, _, Cin = params["dw0"].shape
    final_w = params["final_w"].astype(jnp.float32)            # (4*Cmid, Cout)
    Cout = final_w.shape[1]
    Cmid = final_w.shape[0] // 4
    flips = (
        lambda d: d,                  # branch 1: identity
        lambda d: d[:, ::-1, :],      # branch 2: flip W   -> flip kx
        lambda d: d[::-1, ::-1, :],   # branch 3: flip H,W -> flip ky, kx
        lambda d: d[::-1, :, :],      # branch 4: flip H   -> flip ky
    )
    w_eff = jnp.zeros((K, K, Cin, Cout), jnp.float32)
    for b in range(4):
        dw = flips[b](params[f"dw{b}"].astype(jnp.float32))              # (K,K,Cin)
        mix = params[f"pw{b}"].astype(jnp.float32) @ final_w[b * Cmid:(b + 1) * Cmid]
        w_eff = w_eff + dw[..., None] * mix[None, None]
    if cin_p > Cin:                                            # sublane-align channels
        w_eff = jnp.pad(w_eff, ((0, 0), (0, 0), (0, cin_p - Cin), (0, 0)))
    # Column order (ky, kx, c) matches the kernel's RHS concat order.
    w_fold = w_eff.reshape(K * K * cin_p, Cout).T              # (Cout, K*K*Cin_p)
    bias = params["final_b"].astype(jnp.float32).reshape(Cout, 1)
    return w_fold, bias


# -----------------------------------------------------------------------------
# Tiling / wrapper
# -----------------------------------------------------------------------------
def _pick_row_tile(Ho, Wp, K, cin_p, cout, in_b, out_b, budget=24 * 2**20):
    """Largest row tile TH dividing Ho whose per-step working set (haloed input
    slab + im2col RHS + output slab, double-buffered) fits the VMEM budget."""
    def est(th):
        wpix = th * Wp
        L = _round_up((th + K - 1) * Wp + K - 1, 128)
        return (2 * cin_p * L * in_b            # haloed input slab (x2 buffers)
                + K * K * cin_p * wpix * in_b   # im2col RHS
                + 2 * cout * wpix * out_b       # output slab (x2 buffers)
                + cout * wpix * 4)              # f32 matmul result
    best = 1
    for th in range(1, Ho + 1):
        if Ho % th == 0 and th * Wp <= 16384 and est(th) <= budget:
            best = th
    return best


def multi_stride_windmill_conv2d(params, x_nchw, *, padding=1, compute_dtype=None):
    """Forward pass matching the PyTorch module; input/output are NCHW.
    compute_dtype=jnp.bfloat16 is recommended on v6e/v7x (f32 accumulation is
    kept via preferred_element_type)."""
    N, Cin, H, W = x_nchw.shape
    K = params["dw0"].shape[0]
    assert all(params[f"dw{i}"].shape[0] == K for i in range(4)), \
        "all branch kernel sizes must match (torch.cat needs equal spatial dims)"
    cdt = jnp.dtype(compute_dtype) if compute_dtype is not None else x_nchw.dtype

    Cin_p = _round_up(Cin, 8)                       # sublane-aligned channels
    w_fold, bias = _fold_weights(params, Cin_p)
    Cout, KKC = w_fold.shape
    Ho, Wo = H + 2 * padding - K + 1, W + 2 * padding - K + 1
    Hp, Wp = H + 2 * padding, W + 2 * padding

    in_b = jnp.dtype(cdt).itemsize
    out_b = jnp.dtype(x_nchw.dtype).itemsize
    TH = _pick_row_tile(Ho, Wp, K, Cin_p, Cout, in_b, out_b)
    nT = Ho // TH
    halo = TH + K - 1
    L_raw = halo * Wp
    L = _round_up(L_raw + K - 1, 128)               # room for the last kx shift
    Wpix = TH * Wp

    # Channel-major zero pad (no NHWC transpose), then overlapping haloed row
    # slabs with spatial flattened onto lanes (pure layout work, XLA fuses it).
    xp = jnp.pad(x_nchw, ((0, 0), (0, Cin_p - Cin),
                          (padding, padding), (padding, padding)))
    row_idx = (jnp.arange(nT) * TH)[:, None] + jnp.arange(halo)[None, :]
    xh = jnp.take(xp, row_idx, axis=2)              # (N, Cin_p, nT, halo, Wp)
    xh = jnp.transpose(xh, (0, 2, 1, 3, 4)).reshape(N, nT, Cin_p, L_raw)
    xh = jnp.pad(xh, ((0, 0), (0, 0), (0, 0), (0, L - L_raw))).astype(cdt)
    w_fold = w_fold.astype(cdt)

    # Explicit scoped-VMEM limit sized from the per-step working set.
    est = (2 * Cin_p * L * in_b + KKC * Wpix * in_b + 2 * Cout * Wpix * out_b
           + Cout * Wpix * 4 + 2 * Cout * KKC * in_b)
    vmem_limit = int(min(64 * 2**20, max(32 * 2**20, 3 * est)))

    kernel = functools.partial(_windmill_kernel, K=K, Wp=Wp, Wpix=Wpix)
    out_k = pl.pallas_call(
        kernel,
        out_shape=jax.ShapeDtypeStruct((N, nT, Cout, Wpix), x_nchw.dtype),
        grid=(N, nT),
        in_specs=[
            # haloed row slab: per-step VMEM is O(TH*Wp*Cin), not the whole image
            pl.BlockSpec((None, None, Cin_p, L), lambda n, t: (n, t, 0, 0)),
            pl.BlockSpec((Cout, KKC), lambda n, t: (0, 0)),
            pl.BlockSpec((Cout, 1), lambda n, t: (0, 0)),
        ],
        out_specs=pl.BlockSpec((None, None, Cout, Wpix), lambda n, t: (n, t, 0, 0)),
        compiler_params=pltpu.CompilerParams(
            dimension_semantics=("parallel", "parallel"),
            vmem_limit_bytes=vmem_limit),
    )(xh, w_fold, bias)

    # (N, nT, Cout, TH, Wp) -> NCHW; drop the K-1 junk columns per row.
    out = out_k.reshape(N, nT, Cout, TH, Wp)
    out = jnp.transpose(out, (0, 2, 1, 3, 4)).reshape(N, Cout, Ho, Wp)
    # TODO(synk): also tile the W axis for images where even a 1-row slab's
    # im2col RHS would exceed the VMEM budget.
    return out[:, :, :, :Wo]


# -----------------------------------------------------------------------------
# Params
# -----------------------------------------------------------------------------
def init_params(key, in_channels, out_channels, strides):
    """strides[i] is (due to the original code's positional args) the depthwise
    kernel size of branch i.  Branch convs are bias-free; only the final 1x1
    conv has a bias."""
    assert len(strides) == 4
    keys = jax.random.split(key, 10)
    params = {}
    for i, k in enumerate(strides):
        params[f"dw{i}"] = 0.1 * jax.random.normal(
            keys[2 * i], (k, k, in_channels), jnp.float32)
        params[f"pw{i}"] = 0.1 * jax.random.normal(
            keys[2 * i + 1], (in_channels, out_channels), jnp.float32)
    params["final_w"] = 0.1 * jax.random.normal(
        keys[8], (4 * out_channels, out_channels), jnp.float32)
    params["final_b"] = 0.1 * jax.random.normal(
        keys[9], (out_channels,), jnp.float32)
    return params


# -----------------------------------------------------------------------------
# Pure-JAX reference (branch-by-branch, with explicit activation flips)
# -----------------------------------------------------------------------------
def _sep_conv_ref(x, dw, pw, padding):
    N, H, W, Cin = x.shape
    K = dw.shape[0]
    Ho = H + 2 * padding - K + 1
    Wo = W + 2 * padding - K + 1
    xp = jnp.pad(x, ((0, 0), (padding, padding), (padding, padding), (0, 0)))
    acc = jnp.zeros((N, Ho, Wo, Cin), jnp.float32)
    for dy in range(K):
        for dx in range(K):
            acc = acc + xp[:, dy:dy + Ho, dx:dx + Wo, :] * dw[dy, dx]
    return jnp.einsum("nhwc,cd->nhwd", acc, pw)


def multi_stride_windmill_ref(params, x_nchw, *, padding=1):
    x = jnp.transpose(x_nchw, (0, 2, 3, 1))
    sep = lambda xin, i: _sep_conv_ref(xin, params[f"dw{i}"], params[f"pw{i}"],
                                       padding)
    x1 = sep(x, 0)
    x2 = jnp.flip(sep(jnp.flip(x, 2), 1), 2)
    x3 = jnp.flip(sep(jnp.flip(x, (1, 2)), 2), (1, 2))
    x4 = jnp.flip(sep(jnp.flip(x, 1), 3), 1)
    xc = jnp.concatenate((x1, x2, x3, x4), axis=-1)
    y = jnp.einsum("nhwc,cd->nhwd", xc, params["final_w"]) + params["final_b"]
    return jnp.transpose(y, (0, 3, 1, 2))


# -----------------------------------------------------------------------------
if __name__ == "__main__":
    in_channels, out_channels = 4, 8
    strides = [3, 3, 3, 3]   # depthwise kernel sizes (must be equal for cat)
    padding = 1
    N, H, W = 2, 16, 16

    key = jax.random.PRNGKey(0)
    pkey, xkey = jax.random.split(key)
    params = init_params(pkey, in_channels, out_channels, strides)
    x = jax.random.normal(xkey, (N, in_channels, H, W), jnp.float32)

    fwd = jax.jit(functools.partial(multi_stride_windmill_conv2d,
                                    padding=padding))
    out = jax.block_until_ready(fwd(params, x))

    ref = multi_stride_windmill_ref(params, x, padding=padding)
    assert out.shape == (N, out_channels, H, W), out.shape
    max_err = float(jnp.max(jnp.abs(out - ref)))
    assert jnp.allclose(out, ref, atol=1e-4, rtol=1e-4), max_err

    print("KERNEL_OK")
</pallas_src>

<mosaic_0001>
module attributes {stable_mosaic.version = 11 : i64} {
  func.func @_windmill_kernel(%arg0: i32, %arg1: i32, %arg2: memref<1x1x8x384xf32, #tpu.memory_space<vmem>>, %arg3: memref<8x72xf32, #tpu.memory_space<vmem>>, %arg4: memref<8x1xf32, #tpu.memory_space<vmem>>, %arg5: memref<1x1x8x288xf32, #tpu.memory_space<vmem>>) attributes {dimension_semantics = [#tpu.dimension_semantics<parallel>, #tpu.dimension_semantics<parallel>], iteration_bounds = array<i64: 2, 1>, scalar_prefetch = 0 : i64, scratch_operands = 0 : i64, tpu.core_type = #tpu.core_type<tc>, window_params = [{transform_indices = @transform_0, window_bounds = array<i64: 1, 1, 8, 384>}, {pipeline_mode = #tpu.pipeline_mode<synchronous>, transform_indices = @transform_1, window_bounds = array<i64: 8, 72>}, {pipeline_mode = #tpu.pipeline_mode<synchronous>, transform_indices = @transform_2, window_bounds = array<i64: 8, 1>}, {transform_indices = @transform_3, window_bounds = array<i64: 1, 1, 8, 288>}]} {
    %c0 = arith.constant 0 : index
    %c0_0 = arith.constant 0 : index
    %c0_1 = arith.constant 0 : index
    %c0_2 = arith.constant 0 : index
    %0 = vector.load %arg2[%c0, %c0_0, %c0_1, %c0_2] : memref<1x1x8x384xf32, #tpu.memory_space<vmem>>, vector<1x1x8x288xf32>
    %1 = vector.shape_cast %0 : vector<1x1x8x288xf32> to vector<8x288xf32>
    %c0_3 = arith.constant 0 : index
    %c0_4 = arith.constant 0 : index
    %c0_5 = arith.constant 0 : index
    %c1 = arith.constant 1 : index
    %2 = vector.load %arg2[%c0_3, %c0_4, %c0_5, %c1] : memref<1x1x8x384xf32, #tpu.memory_space<vmem>>, vector<1x1x8x288xf32>
    %3 = vector.shape_cast %2 : vector<1x1x8x288xf32> to vector<8x288xf32>
    %c0_6 = arith.constant 0 : index
    %c0_7 = arith.constant 0 : index
    %c0_8 = arith.constant 0 : index
    %c2 = arith.constant 2 : index
    %4 = vector.load %arg2[%c0_6, %c0_7, %c0_8, %c2] : memref<1x1x8x384xf32, #tpu.memory_space<vmem>>, vector<1x1x8x288xf32>
    %5 = vector.shape_cast %4 : vector<1x1x8x288xf32> to vector<8x288xf32>
    %c0_9 = arith.constant 0 : index
    %c0_10 = arith.constant 0 : index
    %c0_11 = arith.constant 0 : index
    %c18 = arith.constant 18 : index
    %6 = vector.load %arg2[%c0_9, %c0_10, %c0_11, %c18] : memref<1x1x8x384xf32, #tpu.memory_space<vmem>>, vector<1x1x8x288xf32>
    %7 = vector.shape_cast %6 : vector<1x1x8x288xf32> to vector<8x288xf32>
    %c0_12 = arith.constant 0 : index
    %c0_13 = arith.constant 0 : index
    %c0_14 = arith.constant 0 : index
    %c19 = arith.constant 19 : index
    %8 = vector.load %arg2[%c0_12, %c0_13, %c0_14, %c19] : memref<1x1x8x384xf32, #tpu.memory_space<vmem>>, vector<1x1x8x288xf32>
    %9 = vector.shape_cast %8 : vector<1x1x8x288xf32> to vector<8x288xf32>
    %c0_15 = arith.constant 0 : index
    %c0_16 = arith.constant 0 : index
    %c0_17 = arith.constant 0 : index
    %c20 = arith.constant 20 : index
    %10 = vector.load %arg2[%c0_15, %c0_16, %c0_17, %c20] : memref<1x1x8x384xf32, #tpu.memory_space<vmem>>, vector<1x1x8x288xf32>
    %11 = vector.shape_cast %10 : vector<1x1x8x288xf32> to vector<8x288xf32>
    %c0_18 = arith.constant 0 : index
    %c0_19 = arith.constant 0 : index
    %c0_20 = arith.constant 0 : index
    %c36 = arith.constant 36 : index
    %12 = vector.load %arg2[%c0_18, %c0_19, %c0_20, %c36] : memref<1x1x8x384xf32, #tpu.memory_space<vmem>>, vector<1x1x8x288xf32>
    %13 = vector.shape_cast %12 : vector<1x1x8x288xf32> to vector<8x288xf32>
    %c0_21 = arith.constant 0 : index
    %c0_22 = arith.constant 0 : index
    %c0_23 = arith.constant 0 : index
    %c37 = arith.constant 37 : index
    %14 = vector.load %arg2[%c0_21, %c0_22, %c0_23, %c37] : memref<1x1x8x384xf32, #tpu.memory_space<vmem>>, vector<1x1x8x288xf32>
    %15 = vector.shape_cast %14 : vector<1x1x8x288xf32> to vector<8x288xf32>
    %c0_24 = arith.constant 0 : index
    %c0_25 = arith.constant 0 : index
    %c0_26 = arith.constant 0 : index
    %c38 = arith.constant 38 : index
    %16 = vector.load %arg2[%c0_24, %c0_25, %c0_26, %c38] : memref<1x1x8x384xf32, #tpu.memory_space<vmem>>, vector<1x1x8x288xf32>
    %17 = vector.shape_cast %16 : vector<1x1x8x288xf32> to vector<8x288xf32>
    %18 = tpu.concatenate %1, %3, %5, %7, %9, %11, %13, %15, %17 in 0 : vector<8x288xf32>, vector<8x288xf32>, vector<8x288xf32>, vector<8x288xf32>, vector<8x288xf32>, vector<8x288xf32>, vector<8x288xf32>, vector<8x288xf32>, vector<8x288xf32> -> vector<72x288xf32>
    %c0_27 = arith.constant 0 : index
    %c0_28 = arith.constant 0 : index
    %19 = vector.load %arg3[%c0_27, %c0_28] : memref<8x72xf32, #tpu.memory_space<vmem>>, vector<8x72xf32>
    %cst = arith.constant dense<0.000000e+00> : vector<8x288xf32>
    %20 = tpu.matmul %19, %18, %cst {dimension_numbers = #tpu.dot_dimension_numbers<[1], [0], [0], [1], [0, 0, 1, 1], [], []>} : vector<8x72xf32>, vector<72x288xf32>, vector<8x288xf32> -> vector<8x288xf32>
    %c0_29 = arith.constant 0 : index
    %c0_30 = arith.constant 0 : index
    %21 = vector.load %arg4[%c0_29, %c0_30] : memref<8x1xf32, #tpu.memory_space<vmem>>, vector<8x1xf32>
    %22 = vector.broadcast %21 : vector<8x1xf32> to vector<8x288xf32>
    %23 = arith.addf %20, %22 : vector<8x288xf32>
    %c0_31 = arith.constant 0 : index
    %c0_32 = arith.constant 0 : index
    %c0_33 = arith.constant 0 : index
    %c0_34 = arith.constant 0 : index
    %24 = vector.load %arg5[%c0_31, %c0_32, %c0_33, %c0_34] : memref<1x1x8x288xf32, #tpu.memory_space<vmem>>, vector<1x1x8x288xf32>
    %25 = vector.shape_cast %24 : vector<1x1x8x288xf32> to vector<8x288xf32>
    %26 = vector.shape_cast %23 : vector<8x288xf32> to vector<1x1x8x288xf32>
    tpu.vector_store %arg5[%c0_31, %c0_32, %c0_33, %c0_34], %26 {strides = array<i32>} : memref<1x1x8x288xf32, #tpu.memory_space<vmem>>, vector<1x1x8x288xf32>,
    return
  }
  func.func @transform_0(%arg0: i32, %arg1: i32) -> (i32, i32, i32, i32) {
    %c0_i32 = arith.constant 0 : i32
    %c0_i32_0 = arith.constant 0 : i32
    %c0_i32_1 = arith.constant 0 : i32
    return %arg0, %arg1, %c0_i32, %c0_i32_0 : i32, i32, i32, i32
  }
  func.func @transform_1(%arg0: i32, %arg1: i32) -> (i32, i32) {
    %c0_i32 = arith.constant 0 : i32
    %c0_i32_0 = arith.constant 0 : i32
    %c0_i32_1 = arith.constant 0 : i32
    return %c0_i32, %c0_i32_0 : i32, i32
  }
  func.func @transform_2(%arg0: i32, %arg1: i32) -> (i32, i32) {
    %c0_i32 = arith.constant 0 : i32
    %c0_i32_0 = arith.constant 0 : i32
    %c0_i32_1 = arith.constant 0 : i32
    return %c0_i32, %c0_i32_0 : i32, i32
  }
  func.func @transform_3(%arg0: i32, %arg1: i32) -> (i32, i32, i32, i32) {
    %c0_i32 = arith.constant 0 : i32
    %c0_i32_0 = arith.constant 0 : i32
    %c0_i32_1 = arith.constant 0 : i32
    return %arg0, %arg1, %c0_i32, %c0_i32_0 : i32, i32, i32, i32
  }
}

</mosaic_0001>

<bundles_post_ra>
// kernel: multi_stride_windmill_conv2d.1
= control target key start
LH: loop header
LB: loop body
LE: loop exit
PB: predicated region body
PF: predicated region fallthrough
CT: control target
= control target key end

     0   :  { %s691_s12 = smov 0   ;;  %s693_s13 = smov 0   ;;  %s781_s0 = inlined_call_operand.vmem [shape: f32[2,1,8,384], index: 0, kind: input, shape index: {}]   ;;  %s782_s1 = inlined_call_operand.vmem [shape: f32[8,72], index: 1, kind: input, shape index: {}]   ;;  %s783_s2 = inlined_call_operand.vmem [shape: f32[8,1], index: 2, kind: input, shape index: {}]   ;;  %s784_s3 = inlined_call_operand.vmem [shape: f32[2,1,8,288], index: 3, kind: output, shape index: {}]  }
   0x1   :  { %s695_s14 = smov 0  }
   0x2 LB: > { %s25_s15 = sadd.s32 1, %s654_s13  ;;  %p561_p0 = scmp.ge.s32.totalorder %s658_s14, 1  ;;  %s658_s14 = sphi %s695_s14, %s13_s14   ;;  %s654_s13 = sphi %s693_s13, %s786_s13   ;;  %s650_s12 = sphi %s691_s12, %s785_s12  }
   0x3   : > { %p27_p1 = scmp.ge.s32.totalorder %s25_s15, 2  ;;  %p157_p2 = scmp.lt.s32.totalorder %s658_s14, 3 }
   0x5   : > { %s788_s15 = smov (%p27_p1, %s25_s15), 0  ;;  %p158_p3 = pnand %p561_p0, %p157_p2 }
   0x6   : > { %p189_p4 = scmp.lt.s32.totalorder (!%p158_p3), %s650_s12, 1  ;;  %s661_s20 = smov (!%p158_p3), 90  }
   0x7   : > { %161 = sbr.rel (%p158_p3) target bundleno = 379 (0x17b), region = 32  ;;  %s662_s21 = smov (!%p158_p3), 91  }
   0x8   : > { %s663_s22 = smov (!%p158_p3), 92   ;;  %s664_s23 = smov (!%p158_p3), 108  }
   0x9   : > { %s665_s24 = smov (!%p158_p3), 109   ;;  %s666_s25 = smov (!%p158_p3), 110  }
   0xa   : > { %s668_s26 = smov (!%p158_p3), 126   ;;  %s670_s27 = smov (!%p158_p3), 127  }
   0xc   : > { %v660_v0 = vmov 0.0   ;;  %s790_s12 = smov (!%p189_p4, %s650_s12), 1  ;;  %vm667_vm0 = vmmov 0   ;;  %v669_v4 = vmov 0   ;;  %v310_v5 = vld [vmem:[%s783_s2] sm:$0xff]  ;;  %vm303_vm1 = vcmask 736256  }
   0xd   : > { %578 = vmatprep.subr.mxu1 %v660_v0  ;;  %384 = vmatprep.mubr.f32.mxu0 %v660_v0  ;;  %s599_s16 = smul.u32 24, %s790_s12  ;;  %vm291_vm2 = vcmask 744448   ;;  %vm279_vm3 = vcmask 752640   ;;  %vm267_vm4 = vcmask 883712   ;;  %vm255_vm5 = vcmask 891904   ;;  %v309_v46 = vld [vmem:[%s782_s1] sm:$0xff] }
   0xe   : > { %596 = vmatprep.mubr.msk.f32.mxu1 %vm667_vm0, %v660_v0  ;;  %635 = vset.pattern.permute.xlu0 %v669_v4  ;;  %vm243_vm6 = vcmask 900096   ;;  %vm231_vm7 = vcmask 1031168   ;;  %vm219_vm8 = vcmask 1039360   ;;  %vm316_vm9 = vcmask 588800  }
   0xf   : > { %s197_s19 = scalar_lea.vmem %s781_s0, %s599_s16  ;;  %vm463_vm10 = vcmask 261120   ;;  %s206_s7 = scalar_lea.vmem %s784_s3, %s599_s16 }
  0x10   : > { %v719_v1 = vld [vmem:[%s197_s19 + $0x8] sm:$0xff]  ;;  %v721_v2 = vld [vmem:[%s197_s19] sm:$0xff]  ;;  %v725_v3 = vld [vmem:[%s197_s19 + $0x10] sm:$0xff] }
  0x11   : > { %299 = vrot.lane.b32.xlu0 %v719_v1, %s661_s20  ;;  %297 = vrot.lane.b32.xlu1 %v721_v2, %s661_s20 }
  0x15   : > { %301 = vrot.lane.b32.xlu0 %v725_v3, %s661_s20  ;;  %287 = vrot.lane.b32.xlu1 %v719_v1, %s662_s21 }
  0x19   : > { %289 = vrot.lane.b32.xlu0 %v725_v3, %s662_s21  ;;  %285 = vrot.lane.b32.xlu1 %v721_v2, %s662_s21 }
  0x1d   : > { %275 = vrot.lane.b32.xlu0 %v719_v1, %s663_s22  ;;  %277 = vrot.lane.b32.xlu1 %v725_v3, %s663_s22 }
  0x21   : > { %273 = vrot.lane.b32.xlu0 %v721_v2, %s663_s22  ;;  %263 = vrot.lane.b32.xlu1 %v719_v1, %s664_s23 }
  0x25   : > { %265 = vrot.lane.b32.xlu0 %v725_v3, %s664_s23  ;;  %261 = vrot.lane.b32.xlu1 %v721_v2, %s664_s23 }
  0x29   : > { %251 = vrot.lane.b32.xlu0 %v719_v1, %s665_s24  ;;  %253 = vrot.lane.b32.xlu1 %v725_v3, %s665_s24 }
  0x2d   : > { %249 = vrot.lane.b32.xlu0 %v721_v2, %s665_s24  ;;  %239 = vrot.lane.b32.xlu1 %v719_v1, %s666_s25 }
  0x31   : > { %241 = vrot.lane.b32.xlu0 %v725_v3, %s666_s25  ;;  %237 = vrot.lane.b32.xlu1 %v721_v2, %s666_s25 }
  0x35   : > { %227 = vrot.lane.b32.xlu0 %v719_v1, %s668_s26  ;;  %229 = vrot.lane.b32.xlu1 %v725_v3, %s668_s26 }
  0x39   : > { %225 = vrot.lane.b32.xlu0 %v721_v2, %s668_s26  ;;  %215 = vrot.lane.b32.xlu1 %v719_v1, %s670_s27 }
  0x3d   : > { %217 = vrot.lane.b32.xlu0 %v725_v3, %s670_s27  ;;  %213 = vrot.lane.b32.xlu1 %v721_v2, %s670_s27 }
  0x41   : > { %313 = vperm.xlu0 %635, %v310_v5  }
  0x83   : > { %v300_v6 = vpop.permute.xlu0 %299  ;;  %v298_v7 = vpop.permute.xlu1 %297 }
  0x84   : > { %v304_v11 = vsel %vm303_vm1, %v298_v7, %v300_v6 }
  0x87   : > { %v302_v8 = vpop.permute.xlu0 %301  ;;  %v288_v9 = vpop.permute.xlu1 %287 }
  0x88   : > { %579 = vmatpush3.msra.mxu1 %v302_v8  ;;  %v305_v10 = vsel %vm303_vm1, %v300_v6, %v302_v8 }
  0x89   : > { %334 = vmatprep.subr.mxu0 %v305_v10  ;;  %580 = vmatprep.subr.mxu1 %v660_v0 }
  0x8a   : > { %335 = vmatpush1.msra.mxu0 %v304_v11 }
  0x8b   : > { %v290_v12 = vpop.permute.xlu0 %289  ;;  %v286_v13 = vpop.permute.xlu1 %285 }
  0x8c   : > { %581 = vmatpush3.msra.mxu1 %v290_v12  ;;  %v293_v14 = vsel %vm291_vm2, %v288_v9, %v290_v12  ;;  %v292_v15 = vsel %vm291_vm2, %v286_v13, %v288_v9 }
  0x8d   : > { %336 = vmatprep.subr.mxu0 %v293_v14  ;;  %582 = vmatprep.subr.mxu1 %v660_v0 }
  0x8e   : > { %337 = vmatpush1.msra.mxu0 %v292_v15 }
  0x8f   : > { %v276_v16 = vpop.permute.xlu0 %275  ;;  %v278_v17 = vpop.permute.xlu1 %277 }
  0x90   : > { %v281_v18 = vsel %vm279_vm3, %v276_v16, %v278_v17  ;;  %583 = vmatpush3.msra.mxu1 %v278_v17 }
  0x91   : > { %338 = vmatprep.subr.mxu0 %v281_v18  ;;  %584 = vmatprep.subr.mxu1 %v660_v0 }
  0x93   : > { %v274_v19 = vpop.permute.xlu0 %273  ;;  %v264_v20 = vpop.permute.xlu1 %263 }
  0x94   : > { %v280_v21 = vsel %vm279_vm3, %v274_v19, %v276_v16 }
  0x95   : > { %339 = vmatpush1.msra.mxu0 %v280_v21 }
  0x97   : > { %v266_v22 = vpop.permute.xlu0 %265  ;;  %v262_v23 = vpop.permute.xlu1 %261 }
  0x98   : > { %585 = vmatpush3.msra.mxu1 %v266_v22  ;;  %v269_v24 = vsel %vm267_vm4, %v264_v20, %v266_v22  ;;  %v268_v25 = vsel %vm267_vm4, %v262_v23, %v264_v20 }
  0x99   : > { %340 = vmatprep.subr.mxu0 %v269_v24  ;;  %586 = vmatprep.subr.mxu1 %v660_v0 }
  0x9a   : > { %341 = vmatpush1.msra.mxu0 %v268_v25 }
  0x9b   : > { %v252_v26 = vpop.permute.xlu0 %251  ;;  %v254_v27 = vpop.permute.xlu1 %253 }
  0x9c   : > { %v257_v28 = vsel %vm255_vm5, %v252_v26, %v254_v27  ;;  %587 = vmatpush3.msra.mxu1 %v254_v27 }
  0x9d   : > { %342 = vmatprep.subr.mxu0 %v257_v28  ;;  %588 = vmatprep.subr.mxu1 %v660_v0 }
  0x9f   : > { %v250_v29 = vpop.permute.xlu0 %249  ;;  %v240_v30 = vpop.permute.xlu1 %239 }
  0xa0   : > { %v256_v31 = vsel %vm255_vm5, %v250_v29, %v252_v26 }
  0xa1   : > { %343 = vmatpush1.msra.mxu0 %v256_v31 }
  0xa3   : > { %v242_v32 = vpop.permute.xlu0 %241  ;;  %v238_v33 = vpop.permute.xlu1 %237 }
  0xa4   : > { %589 = vmatpush3.msra.mxu1 %v242_v32  ;;  %v245_v34 = vsel %vm243_vm6, %v240_v30, %v242_v32  ;;  %v244_v35 = vsel %vm243_vm6, %v238_v33, %v240_v30 }
  0xa5   : > { %344 = vmatprep.subr.mxu0 %v245_v34  ;;  %590 = vmatprep.subr.mxu1 %v660_v0 }
  0xa6   : > { %345 = vmatpush1.msra.mxu0 %v244_v35 }
  0xa7   : > { %v228_v36 = vpop.permute.xlu0 %227  ;;  %v230_v37 = vpop.permute.xlu1 %229 }
  0xa8   : > { %v233_v38 = vsel %vm231_vm7, %v228_v36, %v230_v37  ;;  %591 = vmatpush3.msra.mxu1 %v230_v37 }
  0xa9   : > { %346 = vmatprep.subr.mxu0 %v233_v38  ;;  %592 = vmatprep.subr.mxu1 %v660_v0 }
  0xab   : > { %v226_v39 = vpop.permute.xlu0 %225  ;;  %v216_v40 = vpop.permute.xlu1 %215 }
  0xac   : > { %v232_v41 = vsel %vm231_vm7, %v226_v39, %v228_v36 }
  0xad   : > { %347 = vmatpush1.msra.mxu0 %v232_v41 }
  0xaf   : > { %v218_v42 = vpop.permute.xlu0 %217  ;;  %v214_v43 = vpop.permute.xlu1 %213 }
  0xb0   : > { %593 = vmatpush3.msra.mxu1 %v218_v42  ;;  %v221_v44 = vsel %vm219_vm8, %v216_v40, %v218_v42  ;;  %v220_v45 = vsel %vm219_vm8, %v214_v43, %v216_v40 }
  0xb1   : > { %348 = vmatprep.subr.mxu0 %v221_v44  ;;  %594 = vmatprep.subr.mxu1 %v660_v0 }
  0xb2   : > { %349 = vmatpush1.msra.mxu0 %v220_v45  ;;  %595 = vmatpush3.msra.mxu1 %v725_v3 }
  0xb3   : > { %350 = vmatprep.subr.mxu0 %v719_v1  ;;  %597 = vmatmul.mubr.msk.f32.vlgmr.msra.gmra.mxu1 %vm316_vm9, %v309_v46 }
  0xb4   : > { %351 = vmatpush1.msra.mxu0 %v721_v2 }
  0xb5   : > { %564 = vmatmul.mubr.msk.f32.vlgmr.msra.gmra.mxu0 %vm316_vm9, %v309_v46 }
  0xbc   : > { %v314_v47 = vpop.permute.xlu0 %313 }
 0x173   : > { %v457_v48 = vpop.f32.mrf.mxu1 }
 0x174   : > { %v458_v49 = vadd.f32 %v457_v48, %v314_v47 }
 0x175   : > { %v386_v50 = vpop.f32.mrf.mxu0  ;;  %v598_v51 = vpop.f32.mrf.mxu1 }
 0x176   : > { %v387_v52 = vadd.f32 %v386_v50, %v314_v47  ;;  %464 = vst.msk [vmem:[%s206_s7 + $0x10] sm:$0xff] %vm463_vm10, %v458_v49 }
 0x177   : > { %v388_v53 = vpop.f32.mrf.mxu0 }
 0x178   : > { %461 = vst [vmem:[%s206_s7] sm:$0xff] %v387_v52  ;;  %v389_v54 = vadd.f32 %v388_v53, %v314_v47 }
 0x17a   : > { %462 = vst [vmem:[%s206_s7 + $0x8] sm:$0xff] %v389_v54 }
 0x17b PF: > { %s13_s14 = sadd.s32 1, %s658_s14   ;;  %s785_s12 = smov %s654_s13 }
 0x17c   : > { %p10_p5 = scmp.ge.s32.totalorder %s13_s14, 4   ;;  %s786_s13 = smov %s788_s15 }
 0x17e   :  { %12 = sbr.rel (!%p10_p5) target bundleno = 2 (0x2), region = 62 }

</bundles_post_ra>
